<compile_context>
chip_gen: v6e
topology: v6e:2x2x1
jax: 0.10.0
libtpu: 0.0.40
codegen_flags: <defaults>
</compile_context>

<pallas_src>
import jax
import jax.numpy as jnp
from jax.experimental import pallas as pl
from jax.experimental.pallas import tpu as pltpu


def _complex_softmax_kernel(x_ref, o_ref):
    """x_ref/o_ref: (2, tile_r, D) f32 blocks; plane 0 = real, plane 1 = imag."""
    xr = x_ref[0]                          # (tile_r, D)
    xi = x_ref[1] + 1e-10                  # x.imag = x.imag + 1e-10

    sq = xr * xr + xi * xi                 # |x|^2
    nonzero = sq > 0.0
    inv_abs = jax.lax.rsqrt(jnp.where(nonzero, sq, 1.0))   # 1/|x|  (EUP)
    mag = sq * inv_abs                     # |x|; exactly 0 where sq == 0

    # Numerically stable softmax(|x|) along the last (softmax) axis.
    m = jnp.max(mag, axis=-1, keepdims=True)
    e = jnp.exp(mag - m)
    s = jnp.sum(e, axis=-1, keepdims=True)
    sm = e * pl.reciprocal(s)              # exact reciprocal (keep 1e-5 accuracy)

    # cos(angle) = Re/|x|, sin(angle) = Im/|x|; angle(0) = 0 -> (1, 0),
    # matching torch.cos/sin(x.angle()) and arctan2(0, 0) = 0.
    cosp = jnp.where(nonzero, xr * inv_abs, 1.0)
    sinp = jnp.where(nonzero, xi * inv_abs, 0.0)

    o_ref[0] = (sm * cosp).astype(o_ref.dtype)
    o_ref[1] = (sm * sinp).astype(o_ref.dtype)


def _choose_tile_r(rows, d):
    """Row tile: ~1 MiB per (2, tile_r, D) f32 block, multiple of 8 sublanes."""
    bytes_per_row = 2 * d * 4              # real + imag planes, f32
    target = max(8, ((1 << 20) // bytes_per_row) // 8 * 8)
    if rows >= 16:
        # Keep at least 2 grid steps so the "parallel" axis has work to shard
        # across both v7x TensorCores (and the pipeline has steps to overlap).
        half = max(8, (((rows + 1) // 2) + 7) // 8 * 8)
        target = min(target, half)
    rows_pad8 = ((rows + 7) // 8) * 8
    return min(target, rows_pad8)


@jax.jit
def complex_softmax(x):
    """Pallas ComplexSoftMax over the last axis. x: complex64, rank >= 1."""
    orig_shape = x.shape
    d = orig_shape[-1]
    rows = 1
    for s in orig_shape[:-1]:
        rows *= s

    # Pack into one (2, rows, d) f32 array (a single fused XLA pass).
    xr = jnp.real(x).astype(jnp.float32).reshape(rows, d)
    xi = jnp.imag(x).astype(jnp.float32).reshape(rows, d)
    xf = jnp.stack([xr, xi], axis=0)       # (2, rows, d)

    tile_r = _choose_tile_r(rows, d)
    grid_r = pl.cdiv(rows, tile_r)
    rows_pad = grid_r * tile_r
    if rows_pad != rows:
        # Zero-pad rows: pad rows produce finite values and are sliced off.
        xf = jnp.pad(xf, ((0, 0), (0, rows_pad - rows), (0, 0)))

    spec = pl.BlockSpec((2, tile_r, d), lambda i: (0, i, 0))

    out_f = pl.pallas_call(
        _complex_softmax_kernel,
        out_shape=jax.ShapeDtypeStruct((2, rows_pad, d), jnp.float32),
        grid_spec=pltpu.PrefetchScalarGridSpec(
            num_scalar_prefetch=0,
            grid=(grid_r,),
            in_specs=[spec],
            out_specs=spec,
        ),
        compiler_params=pltpu.CompilerParams(
            dimension_semantics=("parallel",),
            vmem_limit_bytes=48 * 1024 * 1024,
        ),
    )(xf)

    out = jax.lax.complex(out_f[0, :rows, :], out_f[1, :rows, :])
    return out.reshape(orig_shape)


def _reference(x):
    """Pure-JAX reference matching the PyTorch forward."""
    xr = jnp.real(x).astype(jnp.float32)
    xi = jnp.imag(x).astype(jnp.float32) + 1e-10
    mag_in = jnp.sqrt(xr * xr + xi * xi)
    sm = jax.nn.softmax(mag_in, axis=-1)
    phase = jnp.arctan2(xi, xr)
    return jax.lax.complex(sm * jnp.cos(phase), sm * jnp.sin(phase))


if __name__ == "__main__":
    key = jax.random.PRNGKey(0)
    kr, ki = jax.random.split(key)
    shape = (2, 4, 16, 16)  # (B, C, H, W); softmax over the last axis (W)
    xr = jax.random.normal(kr, shape, dtype=jnp.float32)
    xi = jax.random.normal(ki, shape, dtype=jnp.float32)
    x = jax.lax.complex(xr, xi)

    out = complex_softmax(x)
    out = jax.block_until_ready(out)

    ref = _reference(x)
    assert out.shape == shape and out.dtype == jnp.complex64
    assert jnp.allclose(jnp.real(out), jnp.real(ref), atol=1e-5, rtol=1e-5)
    assert jnp.allclose(jnp.imag(out), jnp.imag(ref), atol=1e-5, rtol=1e-5)

    print("KERNEL_OK")
</pallas_src>

<mosaic_0001>
module attributes {stable_mosaic.version = 11 : i64} {
  func.func @_complex_softmax_kernel(%arg0: i32, %arg1: memref<2x64x16xf32, #tpu.memory_space<vmem>>, %arg2: memref<2x64x16xf32, #tpu.memory_space<vmem>>) attributes {dimension_semantics = [#tpu.dimension_semantics<parallel>], iteration_bounds = array<i64: 2>, scalar_prefetch = 0 : i64, scratch_operands = 0 : i64, tpu.core_type = #tpu.core_type<tc>, window_params = [{transform_indices = @transform_0, window_bounds = array<i64: 2, 64, 16>}, {transform_indices = @transform_1, window_bounds = array<i64: 2, 64, 16>}]} {
    %c0 = arith.constant 0 : index
    %c0_0 = arith.constant 0 : index
    %c0_1 = arith.constant 0 : index
    %0 = vector.load %arg1[%c0, %c0_0, %c0_1] : memref<2x64x16xf32, #tpu.memory_space<vmem>>, vector<1x64x16xf32>
    %1 = vector.shape_cast %0 : vector<1x64x16xf32> to vector<64x16xf32>
    %c1 = arith.constant 1 : index
    %c0_2 = arith.constant 0 : index
    %c0_3 = arith.constant 0 : index
    %2 = vector.load %arg1[%c1, %c0_2, %c0_3] : memref<2x64x16xf32, #tpu.memory_space<vmem>>, vector<1x64x16xf32>
    %3 = vector.shape_cast %2 : vector<1x64x16xf32> to vector<64x16xf32>
    %cst = arith.constant 1.000000e-10 : f32
    %4 = vector.broadcast %cst : f32 to vector<64x16xf32>
    %5 = arith.addf %3, %4 : vector<64x16xf32>
    %6 = arith.mulf %1, %1 : vector<64x16xf32>
    %7 = arith.mulf %5, %5 : vector<64x16xf32>
    %8 = arith.addf %6, %7 : vector<64x16xf32>
    %cst_4 = arith.constant 0.000000e+00 : f32
    %9 = vector.broadcast %cst_4 : f32 to vector<64x16xf32>
    %10 = arith.cmpf ogt, %8, %9 : vector<64x16xf32>
    %cst_5 = arith.constant 1.000000e+00 : f32
    %11 = vector.broadcast %cst_5 : f32 to vector<64x16xf32>
    %12 = arith.select %10, %8, %11 : vector<64x16xi1>, vector<64x16xf32>
    %13 = math.rsqrt %12 : vector<64x16xf32>
    %14 = arith.mulf %8, %13 : vector<64x16xf32>
    %cst_6 = arith.constant dense<0xFF800000> : vector<64xf32>
    %15 = vector.multi_reduction <maximumf>, %14, %cst_6 [1] : vector<64x16xf32> to vector<64xf32>
    %16 = vector.shape_cast %15 : vector<64xf32> to vector<64x1xf32>
    %17 = vector.broadcast %16 : vector<64x1xf32> to vector<64x16xf32>
    %18 = arith.subf %14, %17 : vector<64x16xf32>
    %19 = math.exp %18 : vector<64x16xf32>
    %cst_7 = arith.constant dense<0.000000e+00> : vector<64xf32>
    %20 = vector.multi_reduction <add>, %19, %cst_7 [1] : vector<64x16xf32> to vector<64xf32>
    %21 = vector.shape_cast %20 : vector<64xf32> to vector<64x1xf32>
    %22 = tpu.reciprocal %21 : vector<64x1xf32> -> vector<64x1xf32>
    %23 = vector.broadcast %22 : vector<64x1xf32> to vector<64x16xf32>
    %24 = arith.mulf %19, %23 : vector<64x16xf32>
    %25 = arith.mulf %1, %13 : vector<64x16xf32>
    %cst_8 = arith.constant 1.000000e+00 : f32
    %26 = vector.broadcast %cst_8 : f32 to vector<64x16xf32>
    %27 = arith.select %10, %25, %26 : vector<64x16xi1>, vector<64x16xf32>
    %28 = arith.mulf %5, %13 : vector<64x16xf32>
    %cst_9 = arith.constant 0.000000e+00 : f32
    %29 = vector.broadcast %cst_9 : f32 to vector<64x16xf32>
    %30 = arith.select %10, %28, %29 : vector<64x16xi1>, vector<64x16xf32>
    %31 = arith.mulf %24, %27 : vector<64x16xf32>
    %c0_10 = arith.constant 0 : index
    %c0_11 = arith.constant 0 : index
    %c0_12 = arith.constant 0 : index
    %32 = vector.load %arg2[%c0_10, %c0_11, %c0_12] : memref<2x64x16xf32, #tpu.memory_space<vmem>>, vector<1x64x16xf32>
    %33 = vector.shape_cast %32 : vector<1x64x16xf32> to vector<64x16xf32>
    %34 = vector.shape_cast %31 : vector<64x16xf32> to vector<1x64x16xf32>
    tpu.vector_store %arg2[%c0_10, %c0_11, %c0_12], %34 {strides = array<i32>} : memref<2x64x16xf32, #tpu.memory_space<vmem>>, vector<1x64x16xf32>,
    %35 = arith.mulf %24, %30 : vector<64x16xf32>
    %c1_13 = arith.constant 1 : index
    %c0_14 = arith.constant 0 : index
    %c0_15 = arith.constant 0 : index
    %36 = vector.load %arg2[%c1_13, %c0_14, %c0_15] : memref<2x64x16xf32, #tpu.memory_space<vmem>>, vector<1x64x16xf32>
    %37 = vector.shape_cast %36 : vector<1x64x16xf32> to vector<64x16xf32>
    %38 = vector.shape_cast %35 : vector<64x16xf32> to vector<1x64x16xf32>
    tpu.vector_store %arg2[%c1_13, %c0_14, %c0_15], %38 {strides = array<i32>} : memref<2x64x16xf32, #tpu.memory_space<vmem>>, vector<1x64x16xf32>,
    return
  }
  func.func @transform_0(%arg0: i32) -> (i32, i32, i32) {
    %c0_i32 = arith.constant 0 : i32
    %c0_i32_0 = arith.constant 0 : i32
    %c0_i32_1 = arith.constant 0 : i32
    return %c0_i32, %arg0, %c0_i32_0 : i32, i32, i32
  }
  func.func @transform_1(%arg0: i32) -> (i32, i32, i32) {
    %c0_i32 = arith.constant 0 : i32
    %c0_i32_0 = arith.constant 0 : i32
    %c0_i32_1 = arith.constant 0 : i32
    return %c0_i32, %arg0, %c0_i32_0 : i32, i32, i32
  }
}

</mosaic_0001>

<bundles_post_ra>
// kernel: custom-call.1
= control target key start
LH: loop header
LB: loop body
LE: loop exit
PB: predicated region body
PF: predicated region fallthrough
CT: control target
= control target key end

     0   :  { %s51_s0 = inlined_call_operand.hbm [shape: c64[2,4,16,16], index: 0, kind: input, shape index: {}]   ;;  %s52_s1 = inlined_call_operand.vmem [shape: f32[2,4,16,16], index: 1, kind: output, shape index: {}]  }
   0x1   :  { %s2_s8 = scalar_lea.hbm %s51_s0, 2048 }
   0x2   :  { %3 = vsyncpa [#allocation0], 0  ;;  %s4_s11 = sshll.u32 %s52_s1, 4  ;;  %s5_s11 = int_to_ptr.vmem [resolvable:$true] %s4_s11 }
   0x3   :  { %s20_s12 = scalar_lea.vmem %s5_s11, 2048  ;;  %p25_p1 = scmp.lt.s32.totalorder %s5_s11, %s5_s11 }
   0x4   :  { %p21_p0 = scmp.ne.s32.totalorder %s5_s11, %s20_s12  ;;  %p26_p2 = scmp.lt.s32.totalorder %s20_s12, %s20_s12 }
   0x6   :  { %p27_p3 = por %p26_p2, %p25_p1 }
   0x8   :  { %p28_p4 = pnand %p27_p3, %p21_p0 }
   0xa   :  { %31 = shalt.err (!%p28_p4)  }
   0xb   :  { %7 = dma.hbm_to_vmem [thread:$0]  %s2_s8, 2048, %s5_s11, [#allocation0] }
   0xc   :  { %33 = dma.done.wait [#allocation0], 2048  }
   0xd   :  { %34 = vsyncadd [#allocation0], 4294965248 }
   0xe   :  { %9 = vsyncpa [#allocation0], 1 }

// kernel: custom-call
= control target key start
LH: loop header
LB: loop body
LE: loop exit
PB: predicated region body
PF: predicated region fallthrough
CT: control target
= control target key end

     0   :  { %2 = vsyncpa [#allocation0], 0  ;;  %s47_s0 = inlined_call_operand.hbm [shape: c64[2,4,16,16], index: 0, kind: input, shape index: {}]   ;;  %s48_s1 = inlined_call_operand.vmem [shape: f32[2,4,16,16], index: 1, kind: output, shape index: {}]  }
   0x1   :  { %s3_s8 = sshll.u32 %s48_s1, 4  ;;  %s4_s8 = int_to_ptr.vmem [resolvable:$true] %s3_s8 }
   0x2   :  { %s17_s9 = scalar_lea.vmem %s4_s8, 2048  ;;  %p22_p1 = scmp.lt.s32.totalorder %s4_s8, %s4_s8 }
   0x3   :  { %p18_p0 = scmp.ne.s32.totalorder %s4_s8, %s17_s9  ;;  %p23_p2 = scmp.lt.s32.totalorder %s17_s9, %s17_s9 }
   0x5   :  { %p24_p3 = por %p23_p2, %p22_p1 }
   0x7   :  { %p25_p4 = pnand %p24_p3, %p18_p0 }
   0x9   :  { %28 = shalt.err (!%p25_p4)  }
   0xa   :  { %6 = dma.hbm_to_vmem [thread:$0]  %s47_s0, 2048, %s4_s8, [#allocation0] }
   0xb   :  { %29 = dma.done.wait [#allocation0], 2048  }
   0xc   :  { %30 = vsyncadd [#allocation0], 4294965248 }
   0xd   :  { %8 = vsyncpa [#allocation0], 1 }

// kernel: custom-call.2
= control target key start
LH: loop header
LB: loop body
LE: loop exit
PB: predicated region body
PF: predicated region fallthrough
CT: control target
= control target key end

     0   :  { %s92_s0 = inlined_call_operand.vmem [shape: f32[2,4,16,16], index: 0, kind: input, shape index: {}]   ;;  %s93_s1 = inlined_call_operand.vmem [shape: f32[2,4,16,16], index: 1, kind: input, shape index: {}]   ;;  %s94_s2 = inlined_call_operand.hbm [shape: c64[2,4,16,16], index: 2, kind: output, shape index: {}]  }
   0x1   :  { %s3_s11 = scalar_lea.hbm %s94_s2, 2048 }
   0x2   :  { %4 = vsyncpa [#allocation0], 0  ;;  %s5_s14 = sshll.u32 %s92_s0, 4  ;;  %s6_s14 = int_to_ptr.vmem [resolvable:$true] %s5_s14 }
   0x3   :  { %s18_s15 = scalar_lea.vmem %s6_s14, 2048  ;;  %p23_p1 = scmp.lt.s32.totalorder %s6_s14, %s6_s14 }
   0x4   :  { %p19_p0 = scmp.ne.s32.totalorder %s6_s14, %s18_s15  ;;  %p24_p2 = scmp.lt.s32.totalorder %s18_s15, %s18_s15 }
   0x6   :  { %p25_p3 = por %p24_p2, %p23_p1 }
   0x8   :  { %p26_p4 = pnand %p25_p3, %p19_p0 }
   0xa   :  { %29 = shalt.err (!%p26_p4)  }
   0xb   :  { %8 = dma.vmem_to_hbm [thread:$0]  %s6_s14, 2048, %s94_s2, [#allocation0] }
   0xc   :  { %61 = dma.done.wait [#allocation0], 2048  }
   0xd   :  { %62 = vsyncadd [#allocation0], 4294965248 }
   0xe   :  { %10 = vsyncpa [#allocation0], 1 }
   0xf   :  { %11 = vsyncpa [#allocation1], 0  ;;  %s12_s0 = sshll.u32 %s93_s1, 4  ;;  %s13_s0 = int_to_ptr.vmem [resolvable:$true] %s12_s0 }
  0x10   :  { %s38_s20 = scalar_lea.vmem %s13_s0, 2048  ;;  %p43_p6 = scmp.lt.s32.totalorder %s13_s0, %s13_s0 }
  0x11   :  { %p39_p5 = scmp.ne.s32.totalorder %s13_s0, %s38_s20  ;;  %p44_p7 = scmp.lt.s32.totalorder %s38_s20, %s38_s20 }
  0x13   :  { %p45_p8 = por %p44_p7, %p43_p6 }
  0x15   :  { %p46_p9 = pnand %p45_p8, %p39_p5 }
  0x17   :  { %49 = shalt.err (!%p46_p9)  }
  0x18   :  { %15 = dma.vmem_to_hbm [thread:$0]  %s13_s0, 2048, %s3_s11, [#allocation1] }
  0x19   :  { %63 = dma.done.wait [#allocation1], 2048  }
  0x1a   :  { %64 = vsyncadd [#allocation1], 4294965248 }
  0x1b   :  { %17 = vsyncpa [#allocation1], 1 }

// kernel: complex_softmax.1
= control target key start
LH: loop header
LB: loop body
LE: loop exit
PB: predicated region body
PF: predicated region fallthrough
CT: control target
= control target key end

     0   :  { %s742_s6 = smov 0   ;;  %s744_s7 = smov 0   ;;  %s1124_s0 = inlined_call_operand.vmem [shape: f32[2,128,16], index: 0, kind: input, shape index: {}]   ;;  %s1125_s1 = inlined_call_operand.vmem [shape: f32[2,128,16], index: 1, kind: output, shape index: {}]  }
   0x1   :  { %s746_s8 = smov 0  }
   0x2 LB: > { %s603_s9 = sadd.s32 4294967295, %s730_s8   ;;  %s759_s10 = sadd.s32 1, %s730_s8   ;;  %s730_s8 = sphi %s746_s8, %s1129_s8   ;;  %s726_s7 = sphi %s744_s7, %s1128_s7   ;;  %s722_s6 = sphi %s742_s6, %s1127_s6  }
   0x3   : > { %s15_s11 = ssub.s32 %s730_s8, %s759_s10  ;;  %s18_s12 = sadd.s32 1, %s726_s7 }
   0x4   : > { %p16_p0 = scmp.eq.s32.totalorder %s15_s11, 0  ;;  %p25_p1 = scmp.ne.s32.totalorder %s726_s7, %s722_s6 }
   0x5   : > { %p26_p2 = scmp.eq.s32.totalorder %s730_s8, 0  ;;  %p55_p3 = scmp.eq.s32.totalorder %s603_s9, 1 }
   0x6   : > { %s770_s13 = scalar_select %p16_p0, %s726_s7, %s18_s12  }
   0x7   : > { %p27_p4 = por %p26_p2, %p25_p1  ;;  %p772_p5 = por %p55_p3, %p25_p1 }
   0x8   : > { %p606_p6 = scmp.ge.s32.totalorder %s730_s8, 2 }
   0xa   : > { %77 = sbr.rel (%p606_p6) target bundleno = 27 (0x1b), region = 16 }
   0xf   : > { %80 = sbr.rel (!%p27_p4) target bundleno = 27 (0x1b), region = 20  ;;  %s82_s15 = sand.u32 (%p27_p4), 1, %s726_s7  }
  0x10   : > { %s634_s16 = sshll.u32 (%p27_p4), %s730_s8, 6  ;;  %s607_s17 = sshll.u32 (%p27_p4), %s82_s15, 7 }
  0x11   : > { %s782_s20 = scalar_lea.vmem (%p27_p4), %s1124_s0, %s634_s16  ;;  %s84_s21 = scalar_lea.vmem (%p27_p4), [#allocation2], %s607_s17 }
  0x12   : > { %v146_v0 = vld [vmem:[%s782_s20] sm:$0xff] (%p27_p4)  ;;  %v148_v1 = vld [vmem:[%s782_s20 + $0x8] sm:$0xff] (%p27_p4)  ;;  %v150_v2 = vld [vmem:[%s782_s20 + $0x10] sm:$0xff] (%p27_p4) }
  0x13   : > { %147 = vst [vmem:[%s84_s21] sm:$0xff] (%p27_p4), %v146_v0  ;;  %149 = vst [vmem:[%s84_s21 + $0x8] sm:$0xff] (%p27_p4), %v148_v1  ;;  %v152_v3 = vld [vmem:[%s782_s20 + $0x18] sm:$0xff] (%p27_p4)  ;;  %v154_v4 = vld [vmem:[%s782_s20 + $0x20] sm:$0xff] (%p27_p4) }
  0x14   : > { %151 = vst [vmem:[%s84_s21 + $0x10] sm:$0xff] %v150_v2  ;;  %v156_v5 = vld [vmem:[%s782_s20 + $0x28] sm:$0xff]  ;;  %153 = vst [vmem:[%s84_s21 + $0x18] sm:$0xff] %v152_v3  ;;  %v158_v6 = vld [vmem:[%s782_s20 + $0x30] sm:$0xff] }
  0x15   : > { %155 = vst [vmem:[%s84_s21 + $0x20] sm:$0xff] %v154_v4  ;;  %157 = vst [vmem:[%s84_s21 + $0x28] sm:$0xff] %v156_v5  ;;  %v160_v7 = vld [vmem:[%s782_s20 + $0x38] sm:$0xff]  ;;  %v162_v8 = vld [vmem:[%s782_s20 + $0x80] sm:$0xff] }
  0x16   : > { %159 = vst [vmem:[%s84_s21 + $0x30] sm:$0xff] %v158_v6  ;;  %161 = vst [vmem:[%s84_s21 + $0x38] sm:$0xff] %v160_v7  ;;  %v164_v9 = vld [vmem:[%s782_s20 + $0x88] sm:$0xff]  ;;  %v166_v10 = vld [vmem:[%s782_s20 + $0x90] sm:$0xff] }
  0x17   : > { %163 = vst [vmem:[%s84_s21 + $0x40] sm:$0xff] %v162_v8  ;;  %v168_v11 = vld [vmem:[%s782_s20 + $0x98] sm:$0xff]  ;;  %165 = vst [vmem:[%s84_s21 + $0x48] sm:$0xff] %v164_v9  ;;  %v170_v12 = vld [vmem:[%s782_s20 + $0xa0] sm:$0xff] }
  0x18   : > { %167 = vst [vmem:[%s84_s21 + $0x50] sm:$0xff] %v166_v10  ;;  %169 = vst [vmem:[%s84_s21 + $0x58] sm:$0xff] %v168_v11  ;;  %v172_v13 = vld [vmem:[%s782_s20 + $0xa8] sm:$0xff]  ;;  %v174_v14 = vld [vmem:[%s782_s20 + $0xb0] sm:$0xff] }
  0x19   : > { %171 = vst [vmem:[%s84_s21 + $0x60] sm:$0xff] %v170_v12  ;;  %173 = vst [vmem:[%s84_s21 + $0x68] sm:$0xff] %v172_v13  ;;  %v176_v15 = vld [vmem:[%s782_s20 + $0xb8] sm:$0xff] }
  0x1a   : > { %175 = vst [vmem:[%s84_s21 + $0x70] sm:$0xff] %v174_v14  ;;  %177 = vst [vmem:[%s84_s21 + $0x78] sm:$0xff] %v176_v15 }
  0x1b PF: > { %p610_p7 = scmp.ge.s32.totalorder %s730_s8, 1  ;;  %p182_p8 = scmp.lt.s32.totalorder %s730_s8, 3 }
  0x1d   : > { %p183_p9 = pnand %p610_p7, %p182_p8 }
  0x1e   : > { %s189_s22 = sand.u32 (!%p183_p9), 1, %s722_s6  }
  0x1f   : > { %186 = sbr.rel (%p183_p9) target bundleno = 402 (0x192), region = 58  ;;  %s803_s23 = sshll.u32 (!%p183_p9), %s189_s22, 7 }
  0x20   : > { %s806_s24 = scalar_lea.vmem (!%p183_p9), [#allocation2], %s803_s23  ;;  %s1042_s25 = scalar_lea.vmem (!%p183_p9), [#allocation3], %s803_s23 }
  0x24   : > { %v809_v16 = vld [vmem:[%s806_s24] sm:$0xff]  ;;  %v813_v18 = vld [vmem:[%s806_s24 + $0x10] sm:$0xff]  ;;  %v821_v22 = vld [vmem:[%s806_s24 + $0x8] sm:$0xff]  ;;  %vm290_vm8 = vcmask 130048   ;;  %s635_s26 = sshll.u32 (%p772_p5), %s603_s9, 6 }
  0x25   : > { %v613_v17 = vld [vmem:[%s806_s24 + $0x40] sm:$0xff]  ;;  %v234_v20 = vmul.f32 %v809_v16, %v809_v16  ;;  %v615_v21 = vld [vmem:[%s806_s24 + $0x50] sm:$0xff]  ;;  %v614_v23 = vld [vmem:[%s806_s24 + $0x48] sm:$0xff]  ;;  %v236_v25 = vmul.f32 %v813_v18, %v813_v18  ;;  %v235_v27 = vmul.f32 %v821_v22, %v821_v22  ;;  %s453_s29 = scalar_lea.vmem (%p772_p5), %s1125_s1, %s635_s26 }
  0x26   : > { %v815_v19 = vadd.f32 1e-10, %v613_v17  ;;  %v824_v24 = vadd.f32 1e-10, %v615_v21  ;;  %v828_v26 = vadd.f32 1e-10, %v614_v23 }
  0x27   : > { %v833_v28 = vld [vmem:[%s806_s24 + $0x18] sm:$0xff]  ;;  %v843_v33 = vld [vmem:[%s806_s24 + $0x20] sm:$0xff]  ;;  %v847_v35 = vld [vmem:[%s806_s24 + $0x28] sm:$0xff] }
  0x28   : > { %v616_v29 = vld [vmem:[%s806_s24 + $0x58] sm:$0xff]  ;;  %v242_v30 = vmul.f32 %v815_v19, %v815_v19  ;;  %v237_v32 = vmul.f32 %v833_v28, %v833_v28  ;;  %v617_v34 = vld [vmem:[%s806_s24 + $0x60] sm:$0xff]  ;;  %v244_v36 = vmul.f32 %v824_v24, %v824_v24  ;;  %v243_v37 = vmul.f32 %v828_v26, %v828_v26  ;;  %v618_v40 = vld [vmem:[%s806_s24 + $0x68] sm:$0xff] }
  0x29   : > { %v838_v31 = vadd.f32 1e-10, %v616_v29  ;;  %v853_v38 = vadd.f32 1e-10, %v617_v34  ;;  %v238_v39 = vmul.f32 %v843_v33, %v843_v33  ;;  %v859_v41 = vld [vmem:[%s806_s24 + $0x30] sm:$0xff]  ;;  %v239_v46 = vmul.f32 %v847_v35, %v847_v35  ;;  %v620_v56 = vld [vmem:[%s806_s24 + $0x78] sm:$0xff] }
  0x2a   : > { %v619_v42 = vld [vmem:[%s806_s24 + $0x70] sm:$0xff]  ;;  %v250_v43 = vadd.f32 %v242_v30, %v234_v20  ;;  %v864_v45 = vadd.f32 1e-10, %v618_v40  ;;  %v252_v47 = vadd.f32 %v244_v36, %v236_v25  ;;  %v868_v48 = vadd.f32 %v243_v37, %v235_v27  ;;  %v891_v59 = vld [vmem:[%s806_s24 + $0x38] sm:$0xff] }
  0x2b   : > { %v245_v44 = vmul.f32 %v838_v31, %v838_v31  ;;  %v246_v49 = vmul.f32 %v853_v38, %v853_v38  ;;  %v872_v50 = vadd.f32 1e-10, %v619_v42  ;;  %v240_v53 = vmul.f32 %v859_v41, %v859_v41 }
  0x2c   : > { %vm258_vm0 = vcmp.gt.f32.partialorder %v250_v43, 0.0  ;;  %v247_v52 = vmul.f32 %v864_v45, %v864_v45  ;;  %vm260_vm1 = vcmp.gt.f32.partialorder %v252_v47, 0.0  ;;  %vm259_vm2 = vcmp.gt.f32.partialorder %v868_v48, 0.0 }
  0x2d   : > { %v874_v51 = vadd.f32 %v245_v44, %v237_v32  ;;  %v266_v54 = vsel %vm258_vm0, %v250_v43, 1.0  ;;  %v882_v55 = vadd.f32 %v246_v49, %v238_v39  ;;  %v268_v57 = vsel %vm260_vm1, %v252_v47, 1.0 }
  0x2e   : > { %660 = vrsqrt.f32 %v266_v54  ;;  %v267_v58 = vsel %vm259_vm2, %v868_v48, 1.0  ;;  %v897_v61 = vadd.f32 %v247_v52, %v239_v46  ;;  %v248_v63 = vmul.f32 %v872_v50, %v872_v50 }
  0x2f   : > { %vm261_vm3 = vcmp.gt.f32.partialorder %v874_v51, 0.0  ;;  %662 = vrsqrt.f32 %v268_v57  ;;  %vm262_vm4 = vcmp.gt.f32.partialorder %v882_v55, 0.0  ;;  %v904_v0 = vadd.f32 1e-10, %v620_v56 }
  0x30   : > { %v269_v60 = vsel %vm261_vm3, %v874_v51, 1.0  ;;  %664 = vrsqrt.f32 %v267_v58  ;;  %v270_v62 = vsel %vm262_vm4, %v882_v55, 1.0  ;;  %vm263_vm5 = vcmp.gt.f32.partialorder %v897_v61, 0.0 }
  0x31   : > { %666 = vrsqrt.f32 %v269_v60  ;;  %v241_v1 = vmul.f32 %v891_v59, %v891_v59  ;;  %v271_v2 = vsel %vm263_vm5, %v897_v61, 1.0  ;;  %v912_v3 = vadd.f32 %v248_v63, %v240_v53 }
  0x32   : > { %668 = vrsqrt.f32 %v270_v62  ;;  %v249_v4 = vmul.f32 %v904_v0, %v904_v0 }
  0x33   : > { %670 = vrsqrt.f32 %v271_v2  ;;  %vm264_vm6 = vcmp.gt.f32.partialorder %v912_v3, 0.0 }
  0x34   : > { %v917_v5 = vadd.f32 %v249_v4, %v241_v1  ;;  %v272_v6 = vsel %vm264_vm6, %v912_v3, 1.0 }
  0x35   : > { %672 = vrsqrt.f32 %v272_v6 }
  0x36   : > { %vm265_vm7 = vcmp.gt.f32.partialorder %v917_v5, 0.0 }
  0x37   : > { %v273_v7 = vsel %vm265_vm7, %v917_v5, 1.0 }
  0x38   : > { %674 = vrsqrt.f32 %v273_v7 }
  0x3b   : > { %v661_v8 = vpop.eup %660 }
  0x3c   : > { %v663_v9 = vpop.eup %662  ;;  %v926_v10 = vmul.f32 %v661_v8, %v250_v43  ;;  %v379_v11 = vmul.f32 %v661_v8, %v809_v16  ;;  %v395_v12 = vmul.f32 %v661_v8, %v815_v19 }
  0x3d   : > { %v665_v13 = vpop.eup %664  ;;  %v930_v14 = vmul.f32 %v663_v9, %v252_v47  ;;  %v381_v15 = vmul.f32 %v663_v9, %v813_v18  ;;  %v397_v17 = vmul.f32 %v663_v9, %v824_v24 }
  0x3e   : > { %v667_v20 = vpop.eup %666  ;;  %v291_v21 = vsel %vm290_vm8, %v926_v10, -inf  ;;  %v937_v23 = vsel %vm258_vm0, %v379_v11, 1.0  ;;  %v940_v25 = vsel %vm258_vm0, %v395_v12, 0.0  ;;  %v943_v16 = vmul.f32 %v665_v13, %v868_v48 }
  0x3f   : > { %v669_v19 = vpop.eup %668  ;;  %292 = vmax.xlane.f32.xlu0 %v291_v21  ;;  %v297_v18 = vsel %vm290_vm8, %v930_v14, -inf  ;;  %v948_v24 = vsel %vm260_vm1, %v381_v15, 1.0  ;;  %v951_v27 = vsel %vm260_vm1, %v397_v17, 0.0  ;;  %v380_v29 = vmul.f32 %v665_v13, %v821_v22 }
  0x40   : > { %v671_v30 = vpop.eup %670  ;;  %298 = vmax.xlane.f32.xlu1 %v297_v18  ;;  %v294_v32 = vsel %vm290_vm8, %v943_v16, -inf  ;;  %v396_v34 = vmul.f32 %v665_v13, %v828_v26  ;;  %v285_v36 = vmul.f32 %v667_v20, %v874_v51  ;;  %v382_v37 = vmul.f32 %v667_v20, %v833_v28 }
  0x41   : > { %v961_v39 = vsel %vm259_vm2, %v380_v29, 1.0  ;;  %v398_v40 = vmul.f32 %v667_v20, %v838_v31  ;;  %v286_v42 = vmul.f32 %v669_v19, %v882_v55  ;;  %v383_v22 = vmul.f32 %v669_v19, %v843_v33 }
  0x42   : > { %v968_v43 = vsel %vm259_vm2, %v396_v34, 0.0  ;;  %v300_v26 = vsel %vm290_vm8, %v285_v36, -inf  ;;  %v973_v44 = vsel %vm261_vm3, %v382_v37, 1.0  ;;  %v399_v28 = vmul.f32 %v669_v19, %v853_v38  ;;  %v673_v46 = vpop.eup %672 }
  0x43   : > { %295 = vmax.xlane.f32.xlu0 %v294_v32  ;;  %v978_v31 = vsel %vm261_vm3, %v398_v40, 0.0  ;;  %v303_v33 = vsel %vm290_vm8, %v286_v42, -inf  ;;  %v983_v47 = vsel %vm262_vm4, %v383_v22, 1.0  ;;  %v287_v48 = vmul.f32 %v671_v30, %v897_v61 }
  0x44   : > { %301 = vmax.xlane.f32.xlu1 %v300_v26  ;;  %v988_v49 = vsel %vm262_vm4, %v399_v28, 0.0  ;;  %v384_v38 = vmul.f32 %v671_v30, %v847_v35  ;;  %v400_v52 = vmul.f32 %v671_v30, %v864_v45  ;;  %v288_v51 = vmul.f32 %v673_v46, %v912_v3 }
  0x45   : > { %v675_v53 = vpop.eup %674  ;;  %v306_v54 = vsel %vm290_vm8, %v287_v48, -inf  ;;  %v385_v56 = vmul.f32 %v673_v46, %v859_v41  ;;  %v401_v57 = vmul.f32 %v673_v46, %v872_v50 }
  0x46   : > { %v998_v58 = vsel %vm263_vm5, %v384_v38, 1.0  ;;  %v1002_v55 = vsel %vm263_vm5, %v400_v52, 0.0  ;;  %v289_v35 = vmul.f32 %v675_v53, %v917_v5  ;;  %v386_v50 = vmul.f32 %v675_v53, %v891_v59 }
  0x47   : > { %304 = vmax.xlane.f32.xlu0 %v303_v33  ;;  %v1007_v45 = vsel %vm264_vm6, %v385_v56, 1.0  ;;  %v1011_v41 = vsel %vm264_vm6, %v401_v57, 0.0  ;;  %v402_v60 = vmul.f32 %v675_v53, %v904_v0  ;;  %v309_v61 = vsel %vm290_vm8, %v288_v51, -inf }
  0x48   : > { %307 = vmax.xlane.f32.xlu1 %v306_v54  ;;  %v312_v62 = vsel %vm290_vm8, %v289_v35, -inf  ;;  %v1019_v63 = vsel %vm265_vm7, %v386_v50, 1.0 }
  0x49   : > { %v1023_v1 = vsel %vm265_vm7, %v402_v60, 0.0 }
  0x4b   : > { %310 = vmax.xlane.f32.xlu0 %v309_v61 }
  0x4c   : > { %313 = vmax.xlane.f32.xlu1 %v312_v62 }
  0xc8   : > { %v293_v2 = vpop.xlane.xlu0 %292 }
  0xc9   : > { %v315_v59 = vsub.f32 %v926_v10, %v293_v2  ;;  %v299_v3 = vpop.xlane.xlu1 %298 }
  0xca   : > { %v317_v0 = vsub.f32 %v930_v14, %v299_v3 }
  0xcb   : > { %v323_v4 = vmul.f32 1.442695, %v315_v59 }
  0xcc   : > { %v327_v6 = vmul.f32 1.442695, %v317_v0  ;;  %v296_v7 = vpop.xlane.xlu0 %295 }
  0xcd   : > { %676 = vpow2.f32 %v323_v4  ;;  %v316_v8 = vsub.f32 %v943_v16, %v296_v7  ;;  %v302_v9 = vpop.xlane.xlu1 %301 }
  0xce   : > { %678 = vpow2.f32 %v327_v6  ;;  %v318_v11 = vsub.f32 %v285_v36, %v302_v9 }
  0xcf   : > { %v325_v5 = vmul.f32 1.442695, %v316_v8 }
  0xd0   : > { %v329_v12 = vmul.f32 1.442695, %v318_v11  ;;  %v305_v13 = vpop.xlane.xlu0 %304 }
  0xd1   : > { %680 = vpow2.f32 %v325_v5  ;;  %v319_v15 = vsub.f32 %v286_v42, %v305_v13  ;;  %v308_v17 = vpop.xlane.xlu1 %307 }
  0xd2   : > { %682 = vpow2.f32 %v329_v12  ;;  %v320_v10 = vsub.f32 %v287_v48, %v308_v17 }
  0xd3   : > { %v331_v20 = vmul.f32 1.442695, %v319_v15 }
  0xd4   : > { %v333_v21 = vmul.f32 1.442695, %v320_v10  ;;  %v311_v14 = vpop.xlane.xlu0 %310 }
  0xd5   : > { %684 = vpow2.f32 %v331_v20  ;;  %v321_v19 = vsub.f32 %v288_v51, %v311_v14  ;;  %v314_v18 = vpop.xlane.xlu1 %313 }
  0xd6   : > { %686 = vpow2.f32 %v333_v21  ;;  %v322_v29 = vsub.f32 %v289_v35, %v314_v18 }
  0xd7   : > { %v335_v16 = vmul.f32 1.442695, %v321_v19 }
  0xd8   : > { %v337_v30 = vmul.f32 1.442695, %v322_v29 }
  0xd9   : > { %688 = vpow2.f32 %v335_v16 }
  0xda   : > { %v677_v32 = vpop.eup %676  ;;  %690 = vpow2.f32 %v337_v30 }
  0xdb   : > { %v679_v34 = vpop.eup %678  ;;  %v339_v36 = vsel %vm290_vm8, %v677_v32, 0.0 }
  0xdc   : > { %340 = vadd.xlane.f32.xlu0 %v339_v36  ;;  %v345_v37 = vsel %vm290_vm8, %v679_v34, 0.0 }
  0xde   : > { %v681_v40 = vpop.eup %680 }
  0xdf   : > { %v683_v42 = vpop.eup %682  ;;  %v342_v22 = vsel %vm290_vm8, %v681_v40, 0.0 }
  0xe0   : > { %346 = vadd.xlane.f32.xlu0 %v345_v37  ;;  %343 = vadd.xlane.f32.xlu1 %v342_v22  ;;  %v348_v26 = vsel %vm290_vm8, %v683_v42, 0.0 }
  0xe2   : > { %v685_v28 = vpop.eup %684 }
  0xe3   : > { %v687_v46 = vpop.eup %686  ;;  %v351_v33 = vsel %vm290_vm8, %v685_v28, 0.0 }
  0xe4   : > { %349 = vadd.xlane.f32.xlu1 %v348_v26  ;;  %352 = vadd.xlane.f32.xlu0 %v351_v33  ;;  %v354_v48 = vsel %vm290_vm8, %v687_v46, 0.0 }
  0xe6   : > { %v689_v38 = vpop.eup %688 }
  0xe7   : > { %v1034_v52 = vpop.eup %690  ;;  %v357_v51 = vsel %vm290_vm8, %v689_v38, 0.0 }
  0xe8   : > { %355 = vadd.xlane.f32.xlu1 %v354_v48  ;;  %358 = vadd.xlane.f32.xlu0 %v357_v51  ;;  %v360_v53 = vsel %vm290_vm8, %v1034_v52, 0.0 }
  0xec   : > { %361 = vadd.xlane.f32.xlu1 %v360_v53 }
 0x165   : > { %v341_v54 = vpop.xlane.xlu0 %340 }
 0x166   : > { %692 = vrcp.f32 %v341_v54 }
 0x169   : > { %v344_v56 = vpop.xlane.xlu1 %343  ;;  %v347_v57 = vpop.xlane.xlu0 %346 }
 0x16a   : > { %694 = vrcp.f32 %v344_v56 }
 0x16b   : > { %696 = vrcp.f32 %v347_v57 }
 0x16d   : > { %v350_v35 = vpop.xlane.xlu1 %349  ;;  %v353_v50 = vpop.xlane.xlu0 %352 }
 0x16e   : > { %698 = vrcp.f32 %v350_v35 }
 0x16f   : > { %700 = vrcp.f32 %v353_v50 }
 0x171   : > { %v356_v60 = vpop.xlane.xlu1 %355  ;;  %v359_v61 = vpop.xlane.xlu0 %358 }
 0x172   : > { %702 = vrcp.f32 %v356_v60 }
 0x173   : > { %v693_v62 = vpop.eup %692  ;;  %704 = vrcp.f32 %v359_v61 }
 0x174   : > { %v371_v2 = vmul.f32 %v693_v62, %v677_v32 }
 0x175   : > { %v362_v59 = vpop.xlane.xlu1 %361 }
 0x176   : > { %v411_v3 = vmul.f32 %v937_v23, %v371_v2  ;;  %v427_v0 = vmul.f32 %v940_v25, %v371_v2  ;;  %706 = vrcp.f32 %v362_v59 }
 0x177   : > { %v695_v4 = vpop.eup %694 }
 0x178   : > { %v697_v6 = vpop.eup %696  ;;  %419 = vst.msk [vmem:[%s1042_s25] sm:$0xff] %vm290_vm8, %v411_v3  ;;  %621 = vst.msk [vmem:[%s1042_s25 + $0x40] sm:$0xff] %vm290_vm8, %v427_v0  ;;  %v372_v7 = vmul.f32 %v695_v4, %v681_v40 }
 0x179   : > { %v373_v8 = vmul.f32 %v697_v6, %v679_v34 }
 0x17a   : > { %v412_v23 = vmul.f32 %v961_v39, %v372_v7  ;;  %v428_v25 = vmul.f32 %v968_v43, %v372_v7 }
 0x17b   : > { %v699_v9 = vpop.eup %698  ;;  %v413_v11 = vmul.f32 %v948_v24, %v373_v8  ;;  %v429_v5 = vmul.f32 %v951_v27, %v373_v8 }
 0x17c   : > { %v701_v12 = vpop.eup %700  ;;  %420 = vst.msk [vmem:[%s1042_s25 + $0x8] sm:$0xff] %vm290_vm8, %v412_v23  ;;  %622 = vst.msk [vmem:[%s1042_s25 + $0x48] sm:$0xff] %vm290_vm8, %v428_v25  ;;  %v374_v13 = vmul.f32 %v699_v9, %v683_v42 }
 0x17d   : > { %421 = vst.msk [vmem:[%s1042_s25 + $0x10] sm:$0xff] %vm290_vm8, %v413_v11  ;;  %623 = vst.msk [vmem:[%s1042_s25 + $0x50] sm:$0xff] %vm290_vm8, %v429_v5  ;;  %v375_v39 = vmul.f32 %v701_v12, %v685_v28 }
 0x17e   : > { %v414_v43 = vmul.f32 %v973_v44, %v374_v13  ;;  %v430_v24 = vmul.f32 %v978_v31, %v374_v13 }
 0x17f   : > { %v703_v15 = vpop.eup %702  ;;  %v415_v27 = vmul.f32 %v983_v47, %v375_v39  ;;  %v431_v17 = vmul.f32 %v988_v49, %v375_v39  ;;  %v528_v32 = vld [vmem:[%s1042_s25 + $0x40] sm:$0xff] (%p772_p5) }
 0x180   : > { %v705_v10 = vpop.eup %704  ;;  %422 = vst.msk [vmem:[%s1042_s25 + $0x18] sm:$0xff] %vm290_vm8, %v414_v43  ;;  %624 = vst.msk [vmem:[%s1042_s25 + $0x58] sm:$0xff] %vm290_vm8, %v430_v24  ;;  %v376_v20 = vmul.f32 %v703_v15, %v687_v46 }
 0x181   : > { %423 = vst.msk [vmem:[%s1042_s25 + $0x20] sm:$0xff] %vm290_vm8, %v415_v27  ;;  %625 = vst.msk [vmem:[%s1042_s25 + $0x60] sm:$0xff] %vm290_vm8, %v431_v17  ;;  %v377_v44 = vmul.f32 %v705_v10, %v689_v38 }
 0x182   : > { %v416_v31 = vmul.f32 %v998_v58, %v376_v20  ;;  %v432_v47 = vmul.f32 %v1002_v55, %v376_v20  ;;  %v512_v55 = vld [vmem:[%s1042_s25] sm:$0xff] (%p772_p5)  ;;  %529 = vst [vmem:[%s453_s29 + $0x80] sm:$0xff] (%p772_p5), %v528_v32 }
 0x183   : > { %v707_v49 = vpop.eup %706  ;;  %v417_v21 = vmul.f32 %v1007_v45, %v377_v44  ;;  %v433_v14 = vmul.f32 %v1011_v41, %v377_v44  ;;  %v514_v45 = vld [vmem:[%s1042_s25 + $0x8] sm:$0xff] (%p772_p5)  ;;  %513 = vst [vmem:[%s453_s29] sm:$0xff] (%p772_p5), %v512_v55 }
 0x184   : > { %424 = vst.msk [vmem:[%s1042_s25 + $0x28] sm:$0xff] %vm290_vm8, %v416_v31  ;;  %626 = vst.msk [vmem:[%s1042_s25 + $0x68] sm:$0xff] %vm290_vm8, %v432_v47  ;;  %v378_v19 = vmul.f32 %v707_v49, %v1034_v52  ;;  %450 = sbr.rel (!%p772_p5) target bundleno = 402 (0x192), region = 66  ;;  %v516_v41 = vld [vmem:[%s1042_s25 + $0x10] sm:$0xff] (%p772_p5)  ;;  %v530_v34 = vld [vmem:[%s1042_s25 + $0x48] sm:$0xff] (%p772_p5) }
 0x185   : > { %425 = vst.msk [vmem:[%s1042_s25 + $0x30] sm:$0xff] %vm290_vm8, %v417_v21  ;;  %627 = vst.msk [vmem:[%s1042_s25 + $0x70] sm:$0xff] %vm290_vm8, %v433_v14  ;;  %v532_v36 = vld [vmem:[%s1042_s25 + $0x50] sm:$0xff] (%p772_p5) }
 0x186   : > { %v418_v18 = vmul.f32 %v1019_v63, %v378_v19  ;;  %v434_v58 = vmul.f32 %v1023_v1, %v378_v19  ;;  %515 = vst [vmem:[%s453_s29 + $0x8] sm:$0xff] (%p772_p5), %v514_v45  ;;  %517 = vst [vmem:[%s453_s29 + $0x10] sm:$0xff] (%p772_p5), %v516_v41 }
 0x187   : > { %v518_v63 = vld [vmem:[%s1042_s25 + $0x18] sm:$0xff] (%p772_p5)  ;;  %531 = vst [vmem:[%s453_s29 + $0x88] sm:$0xff] (%p772_p5), %v530_v34  ;;  %533 = vst [vmem:[%s453_s29 + $0x90] sm:$0xff] (%p772_p5), %v532_v36 }
 0x188   : > { %426 = vst.msk [vmem:[%s1042_s25 + $0x38] sm:$0xff] %vm290_vm8, %v418_v18  ;;  %628 = vst.msk [vmem:[%s1042_s25 + $0x78] sm:$0xff] %vm290_vm8, %v434_v58  ;;  %v520_v1 = vld [vmem:[%s1042_s25 + $0x20] sm:$0xff] (%p772_p5)  ;;  %v534_v37 = vld [vmem:[%s1042_s25 + $0x58] sm:$0xff] (%p772_p5) }
 0x189   : > { %519 = vst [vmem:[%s453_s29 + $0x18] sm:$0xff] %v518_v63  ;;  %521 = vst [vmem:[%s453_s29 + $0x20] sm:$0xff] %v520_v1  ;;  %v536_v40 = vld [vmem:[%s1042_s25 + $0x60] sm:$0xff] }
 0x18a   : > { %535 = vst [vmem:[%s453_s29 + $0x98] sm:$0xff] %v534_v37  ;;  %537 = vst [vmem:[%s453_s29 + $0xa0] sm:$0xff] %v536_v40 }
 0x18b   : > { %v522_v29 = vld [vmem:[%s1042_s25 + $0x28] sm:$0xff] }
 0x18c   : > { %523 = vst [vmem:[%s453_s29 + $0x28] sm:$0xff] %v522_v29  ;;  %v524_v16 = vld [vmem:[%s1042_s25 + $0x30] sm:$0xff]  ;;  %v538_v42 = vld [vmem:[%s1042_s25 + $0x68] sm:$0xff] }
 0x18d   : > { %525 = vst [vmem:[%s453_s29 + $0x30] sm:$0xff] %v524_v16  ;;  %v540_v22 = vld [vmem:[%s1042_s25 + $0x70] sm:$0xff]  ;;  %539 = vst [vmem:[%s453_s29 + $0xa8] sm:$0xff] %v538_v42 }
 0x18e   : > { %541 = vst [vmem:[%s453_s29 + $0xb0] sm:$0xff] %v540_v22 }
 0x18f   : > { %v526_v30 = vld [vmem:[%s1042_s25 + $0x38] sm:$0xff] }
 0x190   : > { %527 = vst [vmem:[%s453_s29 + $0x38] sm:$0xff] %v526_v30  ;;  %v542_v26 = vld [vmem:[%s1042_s25 + $0x78] sm:$0xff] }
 0x191   : > { %543 = vst [vmem:[%s453_s29 + $0xb8] sm:$0xff] %v542_v26 }
 0x192 PF: > { %p8_p10 = scmp.ge.s32.totalorder %s759_s10, 4   ;;  %s1127_s6 = smov %s726_s7 }
 0x193   : > { %s1128_s7 = smov %s770_s13  ;;  %s1129_s8 = smov %s759_s10 }
 0x194   :  { %10 = sbr.rel (!%p8_p10) target bundleno = 2 (0x2), region = 137 }

</bundles_post_ra>
